<compile_context>
chip_gen: v5e
topology: v5e:2x2
jax: 0.10.0
libtpu: 0.0.40
codegen_flags: <defaults>
</compile_context>

<pallas_src>
import functools

import jax
import jax.numpy as jnp
from jax.experimental import pallas as pl
from jax.experimental.pallas import tpu as pltpu

LANES = 128      # lane width (last dim of every tile)
SUBLANES = 8     # f32 sublane count; partial outputs are one (8,128) vreg
TILE_ROWS = 4096 # rows per grid step: (4096,128) f32 = 2 MiB per input buffer


def _round_up(x, m):
    return ((x + m - 1) // m) * m


def _silog_partial_kernel(est_ref, gt_ref, m_ref,
                          d_ref, d2_ref, cnt_ref, *, groups):
    """Reduce one (groups*8, 128) tile to three (8, 128) partial sums."""
    m = m_ref[...]                                   # bool (block_rows, 128)
    est = est_ref[...].astype(jnp.float32)
    gt = gt_ref[...].astype(jnp.float32)

    # Two logs (matches PyTorch numerics).  Masked / padded / garbage lanes
    # are replaced by 1.0 *before* the log, so they contribute exactly 0.
    d = jnp.log(jnp.where(m, est, 1.0)) - jnp.log(jnp.where(m, gt, 1.0))

    # Sublane-grouped reduce: (block_rows,128) -> (groups,8,128) -> (8,128).
    # The reshape is a pure layout reinterpretation (8-row tiles), and the
    # axis-0 sum is a chain of whole-vreg VPU adds.
    d3 = d.reshape(groups, SUBLANES, LANES)
    c3 = m.astype(jnp.float32).reshape(groups, SUBLANES, LANES)
    d_ref[...] = jnp.sum(d3, axis=0)
    d2_ref[...] = jnp.sum(d3 * d3, axis=0)
    cnt_ref[...] = jnp.sum(c3, axis=0)


def silog_loss_pallas(depth_est, depth_gt, mask, variance_focus,
                      tile_rows=TILE_ROWS):
    """depth_est, depth_gt: float arrays of any (matching) shape.
    mask: boolean (or integer) array of the same shape. Returns scalar f32."""
    n = int(depth_est.size)
    est = jnp.reshape(depth_est, (-1,))
    gt = jnp.reshape(depth_gt, (-1,))
    m = jnp.reshape(mask, (-1,)).astype(jnp.bool_)   # bool = 1 B/elem in HBM

    # Minimal alignment pad to a (8*128)-element boundary so the flat arrays
    # reshape to (rows, 128) with rows % 8 == 0.  Pad values carry mask=False
    # so they are inert; this branch is a no-op for typical image shapes.
    elem_align = SUBLANES * LANES
    n_pad = _round_up(max(n, 1), elem_align)
    if n_pad != n:
        est = jnp.pad(est, (0, n_pad - n))
        gt = jnp.pad(gt, (0, n_pad - n))
        m = jnp.pad(m, (0, n_pad - n))

    rows = n_pad // LANES
    block_rows = min(tile_rows, rows)
    num_blocks = (rows + block_rows - 1) // block_rows

    est2d = est.reshape(rows, LANES)
    gt2d = gt.reshape(rows, LANES)
    m2d = m.reshape(rows, LANES)

    # Ragged last block: est/gt may be read past `rows` (undefined contents),
    # but only the mask has to be valid there -- pad it (and only it) with
    # False out to the block boundary.
    mask_rows = num_blocks * block_rows
    if mask_rows != rows:
        m2d = jnp.pad(m2d, ((0, mask_rows - rows), (0, 0)))

    groups = block_rows // SUBLANES
    kernel = functools.partial(_silog_partial_kernel, groups=groups)

    in_spec = pl.BlockSpec((block_rows, LANES), lambda i: (i, 0))
    out_spec = pl.BlockSpec((SUBLANES, LANES), lambda i: (i, 0))
    part_shape = jax.ShapeDtypeStruct((num_blocks * SUBLANES, LANES),
                                      jnp.float32)

    part_d, part_d2, part_cnt = pl.pallas_call(
        kernel,
        out_shape=(part_shape, part_shape, part_shape),
        grid_spec=pltpu.PrefetchScalarGridSpec(
            num_scalar_prefetch=0,
            grid=(num_blocks,),
            in_specs=[in_spec, in_spec, in_spec],
            out_specs=(out_spec, out_spec, out_spec),
        ),
        compiler_params=pltpu.CompilerParams(
            # Each grid step writes an independent partial, so the axis is
            # truly parallel -> splits across both TensorCores on v7x.
            dimension_semantics=("parallel",)),
    )(est2d, gt2d, m2d)

    # Tiny final combine in plain JAX (num_blocks * 3 KiB of partials).
    cnt = jnp.sum(part_cnt)                 # all-False mask -> NaN, like PyTorch
    mean_d = jnp.sum(part_d) / cnt
    mean_d2 = jnp.sum(part_d2) / cnt
    return jnp.sqrt(mean_d2 - variance_focus * mean_d * mean_d) * 10.0


def silog_loss_ref(depth_est, depth_gt, mask, variance_focus):
    m = mask.astype(jnp.float32)
    d = (jnp.log(jnp.where(mask, depth_est, 1.0))
         - jnp.log(jnp.where(mask, depth_gt, 1.0))) * m
    cnt = jnp.sum(m)
    mean_d = jnp.sum(d) / cnt
    mean_d2 = jnp.sum(d * d) / cnt
    return jnp.sqrt(mean_d2 - variance_focus * mean_d ** 2) * 10.0


if __name__ == "__main__":
    key = jax.random.PRNGKey(0)
    k1, k2, k3 = jax.random.split(key, 3)

    B, C, H, W = 2, 4, 16, 16  # NCHW, as in the PyTorch caller
    depth_est = jax.random.uniform(k1, (B, C, H, W), jnp.float32, 0.5, 5.0)
    depth_gt = jax.random.uniform(k2, (B, C, H, W), jnp.float32, 0.5, 5.0)
    mask = jax.random.uniform(k3, (B, C, H, W)) > 0.3
    variance_focus = 0.85

    loss = silog_loss_pallas(depth_est, depth_gt, mask, variance_focus)
    jax.block_until_ready(loss)

    ref = silog_loss_ref(depth_est, depth_gt, mask, variance_focus)
    assert jnp.allclose(loss, ref, rtol=1e-4, atol=1e-4), (loss, ref)
    print("KERNEL_OK")
</pallas_src>

<mosaic_0001>
module attributes {stable_mosaic.version = 11 : i64} {
  func.func @_silog_partial_kernel(%arg0: i32, %arg1: memref<16x128xf32, #tpu.memory_space<vmem>>, %arg2: memref<16x128xf32, #tpu.memory_space<vmem>>, %arg3: memref<16x128xi32, #tpu.memory_space<vmem>>, %arg4: memref<8x128xf32, #tpu.memory_space<vmem>>, %arg5: memref<8x128xf32, #tpu.memory_space<vmem>>, %arg6: memref<8x128xf32, #tpu.memory_space<vmem>>) attributes {dimension_semantics = [#tpu.dimension_semantics<parallel>], iteration_bounds = array<i64: 1>, scalar_prefetch = 0 : i64, scratch_operands = 0 : i64, tpu.core_type = #tpu.core_type<tc>, window_params = [{transform_indices = @transform_0, window_bounds = array<i64: 16, 128>}, {transform_indices = @transform_1, window_bounds = array<i64: 16, 128>}, {transform_indices = @transform_2, window_bounds = array<i64: 16, 128>}, {transform_indices = @transform_3, window_bounds = array<i64: 8, 128>}, {transform_indices = @transform_4, window_bounds = array<i64: 8, 128>}, {transform_indices = @transform_5, window_bounds = array<i64: 8, 128>}]} {
    %c0 = arith.constant 0 : index
    %c0_0 = arith.constant 0 : index
    %0 = vector.load %arg3[%c0, %c0_0] : memref<16x128xi32, #tpu.memory_space<vmem>>, vector<16x128xi32>
    %cst = arith.constant dense<0> : vector<16x128xi32>
    %1 = arith.cmpi ne, %0, %cst : vector<16x128xi32>
    %c0_1 = arith.constant 0 : index
    %c0_2 = arith.constant 0 : index
    %2 = vector.load %arg1[%c0_1, %c0_2] : memref<16x128xf32, #tpu.memory_space<vmem>>, vector<16x128xf32>
    %c0_3 = arith.constant 0 : index
    %c0_4 = arith.constant 0 : index
    %3 = vector.load %arg2[%c0_3, %c0_4] : memref<16x128xf32, #tpu.memory_space<vmem>>, vector<16x128xf32>
    %cst_5 = arith.constant 1.000000e+00 : f32
    %4 = vector.broadcast %cst_5 : f32 to vector<16x128xf32>
    %5 = arith.select %1, %2, %4 : vector<16x128xi1>, vector<16x128xf32>
    %6 = math.log %5 : vector<16x128xf32>
    %cst_6 = arith.constant 1.000000e+00 : f32
    %7 = vector.broadcast %cst_6 : f32 to vector<16x128xf32>
    %8 = arith.select %1, %3, %7 : vector<16x128xi1>, vector<16x128xf32>
    %9 = math.log %8 : vector<16x128xf32>
    %10 = arith.subf %6, %9 : vector<16x128xf32>
    %11 = vector.shape_cast %10 : vector<16x128xf32> to vector<2x8x128xf32>
    %12 = arith.extui %1 : vector<16x128xi1> to vector<16x128xi32>
    %13 = arith.sitofp %12 : vector<16x128xi32> to vector<16x128xf32>
    %14 = vector.shape_cast %13 : vector<16x128xf32> to vector<2x8x128xf32>
    %cst_7 = arith.constant dense<0.000000e+00> : vector<8x128xf32>
    %15 = vector.multi_reduction <add>, %11, %cst_7 [0] : vector<2x8x128xf32> to vector<8x128xf32>
    %c0_8 = arith.constant 0 : index
    %c0_9 = arith.constant 0 : index
    %16 = vector.load %arg4[%c0_8, %c0_9] : memref<8x128xf32, #tpu.memory_space<vmem>>, vector<8x128xf32>
    tpu.vector_store %arg4[%c0_8, %c0_9], %15 {strides = array<i32>} : memref<8x128xf32, #tpu.memory_space<vmem>>, vector<8x128xf32>,
    %17 = arith.mulf %11, %11 : vector<2x8x128xf32>
    %cst_10 = arith.constant dense<0.000000e+00> : vector<8x128xf32>
    %18 = vector.multi_reduction <add>, %17, %cst_10 [0] : vector<2x8x128xf32> to vector<8x128xf32>
    %c0_11 = arith.constant 0 : index
    %c0_12 = arith.constant 0 : index
    %19 = vector.load %arg5[%c0_11, %c0_12] : memref<8x128xf32, #tpu.memory_space<vmem>>, vector<8x128xf32>
    tpu.vector_store %arg5[%c0_11, %c0_12], %18 {strides = array<i32>} : memref<8x128xf32, #tpu.memory_space<vmem>>, vector<8x128xf32>,
    %cst_13 = arith.constant dense<0.000000e+00> : vector<8x128xf32>
    %20 = vector.multi_reduction <add>, %14, %cst_13 [0] : vector<2x8x128xf32> to vector<8x128xf32>
    %c0_14 = arith.constant 0 : index
    %c0_15 = arith.constant 0 : index
    %21 = vector.load %arg6[%c0_14, %c0_15] : memref<8x128xf32, #tpu.memory_space<vmem>>, vector<8x128xf32>
    tpu.vector_store %arg6[%c0_14, %c0_15], %20 {strides = array<i32>} : memref<8x128xf32, #tpu.memory_space<vmem>>, vector<8x128xf32>,
    return
  }
  func.func @transform_0(%arg0: i32) -> (i32, i32) {
    %c0_i32 = arith.constant 0 : i32
    %c0_i32_0 = arith.constant 0 : i32
    return %arg0, %c0_i32 : i32, i32
  }
  func.func @transform_1(%arg0: i32) -> (i32, i32) {
    %c0_i32 = arith.constant 0 : i32
    %c0_i32_0 = arith.constant 0 : i32
    return %arg0, %c0_i32 : i32, i32
  }
  func.func @transform_2(%arg0: i32) -> (i32, i32) {
    %c0_i32 = arith.constant 0 : i32
    %c0_i32_0 = arith.constant 0 : i32
    return %arg0, %c0_i32 : i32, i32
  }
  func.func @transform_3(%arg0: i32) -> (i32, i32) {
    %c0_i32 = arith.constant 0 : i32
    %c0_i32_0 = arith.constant 0 : i32
    return %arg0, %c0_i32 : i32, i32
  }
  func.func @transform_4(%arg0: i32) -> (i32, i32) {
    %c0_i32 = arith.constant 0 : i32
    %c0_i32_0 = arith.constant 0 : i32
    return %arg0, %c0_i32 : i32, i32
  }
  func.func @transform_5(%arg0: i32) -> (i32, i32) {
    %c0_i32 = arith.constant 0 : i32
    %c0_i32_0 = arith.constant 0 : i32
    return %arg0, %c0_i32 : i32, i32
  }
}

</mosaic_0001>

<bundles_post_ra>
// kernel: tpu_custom_call.1
= control target key start
LH: loop header
LB: loop body
LE: loop exit
PB: predicated region body
PF: predicated region fallthrough
CT: control target
= control target key end

     0   :  { %11 = vsyncpa [#allocation3], 0  ;;  %s297_s0 = inlined_call_operand.vmem [shape: f32[16,128], index: 0, kind: input, shape index: {}]   ;;  %s298_s1 = inlined_call_operand.hbm [shape: f32[16,128], index: 1, kind: input, shape index: {}]   ;;  %s299_s2 = inlined_call_operand.vmem [shape: s32[16,128], index: 2, kind: input, shape index: {}]   ;;  %s300_s3 = inlined_call_operand.hbm [shape: f32[8,128], index: 3, kind: output, shape index: {0}]   ;;  %s301_s4 = inlined_call_operand.hbm [shape: f32[8,128], index: 4, kind: output, shape index: {1}]   ;;  %s302_s5 = inlined_call_operand.hbm [shape: f32[8,128], index: 5, kind: output, shape index: {2}]  }
   0x1   :  { %12 = vsyncpa [#allocation4], 0 }
   0x2   :  { %13 = vsyncpa [#allocation7], 0  ;;  %s20_s20 = sshll.u32 %s298_s1, 4  ;;  %s236_s21 = smov [#allocation2]   ;;  %s21_s20 = int_to_ptr.hbm [resolvable:$true] %s20_s20 }
   0x3   :  { %s22_s22 = sshll.u32 %s236_s21, 4  ;;  %s237_s23 = smov 128   ;;  %s23_s22 = int_to_ptr.vmem [resolvable:$true] %s22_s22 }
   0x4   :  { %s238_s24 = smov 8  }
   0x5   :  { %28 = dma.hbm_to_vmem [thread:$0]  %s21_s20, 256, %s23_s22, [#allocation3], %s237_s23, %s237_s23, %s238_s24  }
   0x6   :  { %230 = dma.done.wait [#allocation3], 256  }
   0x7   :  { %231 = vsyncadd [#allocation3], 4294967040  ;;  %v35_v0 = vld [vmem:[%s299_s2] sm:$0xff]  ;;  %v36_v1 = vld [vmem:[%s299_s2 + $0x8] sm:$0xff]  ;;  %v239_v10 = vmov 0.0   ;;  %s76_s9 = sshll.u32 %s300_s3, 4  ;;  %s77_s9 = int_to_ptr.hbm [resolvable:$true] %s76_s9 }
   0x8   :  { %v39_v2 = vld [vmem:[%s297_s0] sm:$0xff]  ;;  %vm37_vm0 = vcmp.ne.s32.totalorder %v35_v0, 0  ;;  %vm38_vm1 = vcmp.ne.s32.totalorder %v36_v1, 0  ;;  %v40_v3 = vld [vmem:[%s297_s0 + $0x8] sm:$0xff]  ;;  %s240_s0 = smov [#allocation5]   ;;  %s241_s10 = smov [#allocation6]  }
   0x9   :  { %v41_v4 = vld [vmem:[#allocation2] sm:$0xff]  ;;  %v42_v5 = vld [vmem:[#allocation2 + $0x8] sm:$0xff]  ;;  %v43_v6 = vsel %vm37_vm0, %v39_v2, 1.0  ;;  %v44_v7 = vsel %vm38_vm1, %v40_v3, 1.0  ;;  %v117_v11 = vsel %vm37_vm0, 1.0, %v239_v10  ;;  %v118_v12 = vsel %vm38_vm1, 1.0, %v239_v10 }
   0xa   :  { %v49_v8 = vsel %vm37_vm0, %v41_v4, 1.0  ;;  %126 = vlog2.f32 %v43_v6  ;;  %v50_v9 = vsel %vm38_vm1, %v42_v5, 1.0  ;;  %v67_v13 = vadd.f32 %v118_v12, %v117_v11  ;;  %s74_s2 = sshll.u32 %s240_s0, 4  ;;  %s85_s11 = sshll.u32 %s241_s10, 4  ;;  %s75_s2 = int_to_ptr.vmem [resolvable:$true] %s74_s2  ;;  %s86_s11 = int_to_ptr.vmem [resolvable:$true] %s85_s11 }
   0xb   :  { %128 = vlog2.f32 %v44_v7  ;;  %s87_s14 = sshll.u32 %s301_s4, 4  ;;  %s242_s15 = smov [#allocation8]   ;;  %s88_s14 = int_to_ptr.hbm [resolvable:$true] %s87_s14 }
   0xc   :  { %130 = vlog2.f32 %v49_v8  ;;  %68 = vst [vmem:[#allocation8] sm:$0xff] %v67_v13  ;;  %s96_s16 = sshll.u32 %s242_s15, 4  ;;  %s98_s19 = sshll.u32 %s302_s5, 4  ;;  %s97_s16 = int_to_ptr.vmem [resolvable:$true] %s96_s16  ;;  %s99_s19 = int_to_ptr.hbm [resolvable:$true] %s98_s19 }
   0xd   :  { %132 = vlog2.f32 %v50_v9 }
  0x10   :  { %v127_v14 = vpop.eup %126 }
  0x11   :  { %v129_v15 = vpop.eup %128  ;;  %v46_v16 = vmul.f32 0.6931472, %v127_v14 }
  0x12   :  { %v131_v17 = vpop.eup %130  ;;  %v48_v18 = vmul.f32 0.6931472, %v129_v15 }
  0x13   :  { %v133_v19 = vpop.eup %132  ;;  %v52_v20 = vmul.f32 0.6931472, %v131_v17 }
  0x14   :  { %v54_v21 = vmul.f32 0.6931472, %v133_v19 }
  0x15   :  { %v55_v22 = vsub.f32 %v46_v16, %v52_v20 }
  0x16   :  { %v56_v23 = vsub.f32 %v48_v18, %v54_v21 }
  0x17   :  { %v63_v24 = vmul.f32 %v55_v22, %v55_v22 }
  0x18   :  { %v64_v25 = vmul.f32 %v56_v23, %v56_v23  ;;  %v61_v26 = vadd.f32 %v56_v23, %v55_v22 }
  0x1a   :  { %v65_v27 = vadd.f32 %v64_v25, %v63_v24  ;;  %62 = vst [vmem:[#allocation5] sm:$0xff] %v61_v26 }
  0x1b   :  { %79 = dma.vmem_to_hbm [thread:$0]  %s75_s2, 128, %s77_s9, [#allocation4]  }
  0x1c   :  { %66 = vst [vmem:[#allocation6] sm:$0xff] %v65_v27 }
  0x1d   :  { %90 = dma.vmem_to_hbm [thread:$0]  %s86_s11, 128, %s88_s14, [#allocation7]  }
  0x1e   :  { %101 = dma.vmem_to_hbm [thread:$0]  %s97_s16, 128, %s99_s19, [#allocation7]  }
  0x1f   :  { %232 = dma.done.wait [#allocation4], 128  }
  0x20   :  { %233 = vsyncadd [#allocation4], 4294967168 }
  0x21   :  { %234 = dma.done.wait [#allocation7], 256  }
  0x22   :  { %235 = vsyncadd [#allocation7], 4294967040 }
  0x23   :  { %114 = vsyncpa [#allocation3], 1 }
  0x24   :  { %115 = vsyncpa [#allocation4], 1 }
  0x25   :  { %116 = vsyncpa [#allocation7], 1 }

</bundles_post_ra>
